<compile_context>
chip_gen: v7x
topology: tpu7x:2x2x1
jax: 0.10.0
libtpu: 0.0.40
codegen_flags: <defaults>
</compile_context>

<pallas_src>
import jax
import jax.numpy as jnp
from jax.experimental import pallas as pl
from jax.experimental.pallas import tpu as pltpu


def _round_up(x, m):
    return ((x + m - 1) // m) * m


# ---------------------------------------------------------------------------
# Kernels
# ---------------------------------------------------------------------------
def _denim_vpu_kernel(wt_ref, x_ref, o_ref):
    """Small-ch channel mix on the VPU.

    x_ref / o_ref : (1, ch, t_s, 128) -- pixels dense on (sublane, lane)
    wt_ref        : (ch*ch,) f32 in SMEM, row-major W^T (wt[c, k] = W[k, c])
    out[c] = sum_k wt[c, k] * x[k]  (unrolled scalar-broadcast MACs)
    """
    ch = x_ref.shape[1]
    x = x_ref[0].astype(jnp.float32)                 # (ch, t_s, 128)
    for c in range(ch):
        acc = x[0] * wt_ref[c * ch]
        for k in range(1, ch):
            acc = acc + x[k] * wt_ref[c * ch + k]
        o_ref[0, c] = acc.astype(o_ref.dtype)


def _denim_mxu_kernel(wt_ref, x_ref, o_ref):
    """Large-ch channel mix on the MXU.

    x_ref / o_ref : (1, ch, t_hw)    wt_ref : (ch, ch) = W^T in VMEM
    """
    y = jnp.dot(wt_ref[...], x_ref[0], preferred_element_type=jnp.float32)
    o_ref[0] = y.astype(o_ref.dtype)


# ---------------------------------------------------------------------------
# Wrapper
# ---------------------------------------------------------------------------
def denim_wo_fusion(I, P, T, Q, *, target_block_bytes=4 << 20):
    """I: (bs, ch, H, W) -> (bs, ch, H, W), matching DeNIM_wo_Fusion.forward."""
    bs, ch, H, W = I.shape
    HW = H * W
    itemsize = jnp.dtype(I.dtype).itemsize
    lane, sub = 128, 8

    # Fuse the loop-invariant weight chain once; the kernel consumes W^T so
    # that out[b, :, pix] = W^T @ I[b, :, pix] in the native NCHW layout.
    WT = jnp.transpose(P @ T @ Q).astype(jnp.float32)          # (ch, ch)

    # Pixel axis: pad only to a lane multiple (<=127 px), never to t_hw.
    HWp = _round_up(HW, lane)
    S = HWp // lane                                            # sublane rows

    x3 = I.reshape(bs, ch, HW)
    if HWp != HW:
        x3 = jnp.pad(x3, ((0, 0), (0, 0), (0, HWp - HW)))

    # ---- tile sizing (shared by both paths) -------------------------------
    bytes_per_srow = ch * lane * itemsize            # one sublane row, all ch
    t_s = max(sub, (target_block_bytes // bytes_per_srow) // sub * sub)
    # Keep >= ~8 total grid steps when the data allows it (megacore on v7x +
    # double-buffered pipeline steady state).
    min_steps = 8
    steps_per_b = -(-min_steps // bs)                # ceil(min_steps / bs)
    if S >= steps_per_b * sub:
        t_s = min(t_s, max(sub, (S // steps_per_b) // sub * sub))
    t_s = min(t_s, S)
    if t_s < S:
        t_s = max(sub, (t_s // sub) * sub)           # (8,128)-aligned block
    grid = (bs, pl.cdiv(S, t_s))                     # ragged tail handled by
                                                     # the pipeline (clipped)

    block_bytes = ch * t_s * lane * itemsize
    # 2 buffers x (in + out) + slack; >= scoped default everywhere, but stays
    # under v7x's 64 MiB physical VMEM.
    vmem_limit = int(min(max(4 * block_bytes + (2 << 20), 32 << 20), 60 << 20))

    cparams = pltpu.CompilerParams(
        dimension_semantics=("parallel", "parallel"),
        vmem_limit_bytes=vmem_limit)
    cost = pl.CostEstimate(
        flops=2 * bs * HWp * ch * ch,
        transcendentals=0,
        bytes_accessed=2 * bs * ch * HWp * itemsize + ch * ch * 4)

    if ch < 8:
        # ---- small-ch path: dense VPU broadcast-MAC, weights in SMEM ------
        x4 = x3.reshape(bs, ch, S, lane)             # metadata-only reshape
        out = pl.pallas_call(
            _denim_vpu_kernel,
            out_shape=jax.ShapeDtypeStruct((bs, ch, S, lane), I.dtype),
            grid_spec=pltpu.PrefetchScalarGridSpec(
                num_scalar_prefetch=0,
                grid=grid,
                in_specs=[
                    pl.BlockSpec(memory_space=pltpu.MemorySpace.SMEM),  # W^T
                    pl.BlockSpec((1, ch, t_s, lane),
                                 lambda b, j: (b, 0, j, 0)),            # pix
                ],
                out_specs=pl.BlockSpec((1, ch, t_s, lane),
                                       lambda b, j: (b, 0, j, 0)),
            ),
            compiler_params=cparams,
            cost_estimate=cost,
        )(WT.reshape(ch * ch), x4)
        out3 = out.reshape(bs, ch, HWp)
    else:
        # ---- large-ch path: MXU matmul over (ch, t_hw) blocks -------------
        t_hw = t_s * lane
        out3 = pl.pallas_call(
            _denim_mxu_kernel,
            out_shape=jax.ShapeDtypeStruct((bs, ch, HWp), I.dtype),
            grid_spec=pltpu.PrefetchScalarGridSpec(
                num_scalar_prefetch=0,
                grid=grid,
                in_specs=[
                    pl.BlockSpec((ch, ch), lambda b, j: (0, 0)),        # W^T
                    pl.BlockSpec((1, ch, t_hw), lambda b, j: (b, 0, j)),
                ],
                out_specs=pl.BlockSpec((1, ch, t_hw), lambda b, j: (b, 0, j)),
            ),
            compiler_params=cparams,
            cost_estimate=cost,
        )(WT, x3)

    if HWp != HW:
        out3 = out3[:, :, :HW]
    return out3.reshape(bs, ch, H, W)                # already NCHW


# ---------------------------------------------------------------------------
# Reference / test
# ---------------------------------------------------------------------------
def _kaiming_normal(key, shape):
    # mimic torch.nn.init.kaiming_normal_ (fan_in = shape[1], gain = sqrt(2))
    fan_in = shape[1]
    std = (2.0 / fan_in) ** 0.5
    return std * jax.random.normal(key, shape, dtype=jnp.float32)


def _reference(I, P, T, Q):
    bs, ch, H, W = I.shape
    x = jnp.transpose(I.reshape(bs, ch, H * W), (0, 2, 1))      # (bs, HW, ch)
    out = x @ P @ T @ Q                                         # (bs, HW, ch)
    out = out.reshape(bs, H, W, -1)
    return jnp.transpose(out, (0, 3, 1, 2))


if __name__ == "__main__":
    # small shapes consistent with the module: bs=2, ch=4, H=W=16, k=8
    bs, ch, H, W, k = 2, 4, 16, 16, 8

    key = jax.random.PRNGKey(0)
    k_i, k_p, k_t, k_q = jax.random.split(key, 4)

    I = jax.random.normal(k_i, (bs, ch, H, W), dtype=jnp.float32)
    P = _kaiming_normal(k_p, (ch, k))
    T = _kaiming_normal(k_t, (k, k))
    Q = _kaiming_normal(k_q, (k, ch))

    out = jax.block_until_ready(denim_wo_fusion(I, P, T, Q))
    ref = _reference(I, P, T, Q)

    assert out.shape == (bs, ch, H, W)
    assert jnp.allclose(out, ref, atol=1e-4, rtol=1e-4), (
        float(jnp.max(jnp.abs(out - ref))))

    print("KERNEL_OK")
</pallas_src>

<mosaic_0001>
module attributes {stable_mosaic.version = 11 : i64} {
  func.func @_denim_vpu_kernel(%arg0: i32, %arg1: i32, %arg2: memref<16xf32, #tpu.memory_space<smem>>, %arg3: memref<1x4x2x128xf32, #tpu.memory_space<vmem>>, %arg4: memref<1x4x2x128xf32, #tpu.memory_space<vmem>>) attributes {dimension_semantics = [#tpu.dimension_semantics<parallel>, #tpu.dimension_semantics<parallel>], iteration_bounds = array<i64: 2, 1>, scalar_prefetch = 0 : i64, scratch_operands = 0 : i64, tpu.core_type = #tpu.core_type<tc>, window_params = [{transform_indices = @transform_0, window_bounds = array<i64: 16>}, {transform_indices = @transform_1, window_bounds = array<i64: 1, 4, 2, 128>}, {transform_indices = @transform_2, window_bounds = array<i64: 1, 4, 2, 128>}]} {
    %c0 = arith.constant 0 : index
    %c0_0 = arith.constant 0 : index
    %c0_1 = arith.constant 0 : index
    %c0_2 = arith.constant 0 : index
    %0 = vector.load %arg3[%c0, %c0_0, %c0_1, %c0_2] : memref<1x4x2x128xf32, #tpu.memory_space<vmem>>, vector<1x4x2x128xf32>
    %1 = vector.shape_cast %0 : vector<1x4x2x128xf32> to vector<4x2x128xf32>
    %2 = vector.extract_strided_slice %1 {offsets = [0, 0, 0], sizes = [1, 2, 128], strides = [1, 1, 1]} : vector<4x2x128xf32> to vector<1x2x128xf32>
    %3 = vector.shape_cast %2 : vector<1x2x128xf32> to vector<2x128xf32>
    %c0_3 = arith.constant 0 : index
    %4 = memref.load %arg2[%c0_3] : memref<16xf32, #tpu.memory_space<smem>>
    %5 = vector.broadcast %4 : f32 to vector<2x128xf32>
    %6 = arith.mulf %3, %5 : vector<2x128xf32>
    %7 = vector.extract_strided_slice %1 {offsets = [1, 0, 0], sizes = [1, 2, 128], strides = [1, 1, 1]} : vector<4x2x128xf32> to vector<1x2x128xf32>
    %8 = vector.shape_cast %7 : vector<1x2x128xf32> to vector<2x128xf32>
    %c1 = arith.constant 1 : index
    %9 = memref.load %arg2[%c1] : memref<16xf32, #tpu.memory_space<smem>>
    %10 = vector.broadcast %9 : f32 to vector<2x128xf32>
    %11 = arith.mulf %8, %10 : vector<2x128xf32>
    %12 = arith.addf %6, %11 : vector<2x128xf32>
    %13 = vector.extract_strided_slice %1 {offsets = [2, 0, 0], sizes = [1, 2, 128], strides = [1, 1, 1]} : vector<4x2x128xf32> to vector<1x2x128xf32>
    %14 = vector.shape_cast %13 : vector<1x2x128xf32> to vector<2x128xf32>
    %c2 = arith.constant 2 : index
    %15 = memref.load %arg2[%c2] : memref<16xf32, #tpu.memory_space<smem>>
    %16 = vector.broadcast %15 : f32 to vector<2x128xf32>
    %17 = arith.mulf %14, %16 : vector<2x128xf32>
    %18 = arith.addf %12, %17 : vector<2x128xf32>
    %19 = vector.extract_strided_slice %1 {offsets = [3, 0, 0], sizes = [1, 2, 128], strides = [1, 1, 1]} : vector<4x2x128xf32> to vector<1x2x128xf32>
    %20 = vector.shape_cast %19 : vector<1x2x128xf32> to vector<2x128xf32>
    %c3 = arith.constant 3 : index
    %21 = memref.load %arg2[%c3] : memref<16xf32, #tpu.memory_space<smem>>
    %22 = vector.broadcast %21 : f32 to vector<2x128xf32>
    %23 = arith.mulf %20, %22 : vector<2x128xf32>
    %24 = arith.addf %18, %23 : vector<2x128xf32>
    %c0_4 = arith.constant 0 : index
    %c0_5 = arith.constant 0 : index
    %c0_6 = arith.constant 0 : index
    %c0_7 = arith.constant 0 : index
    %25 = vector.load %arg4[%c0_4, %c0_5, %c0_6, %c0_7] : memref<1x4x2x128xf32, #tpu.memory_space<vmem>>, vector<1x1x2x128xf32>
    %26 = vector.shape_cast %25 : vector<1x1x2x128xf32> to vector<2x128xf32>
    %27 = vector.shape_cast %24 : vector<2x128xf32> to vector<1x1x2x128xf32>
    tpu.vector_store %arg4[%c0_4, %c0_5, %c0_6, %c0_7], %27 {strides = array<i32>} : memref<1x4x2x128xf32, #tpu.memory_space<vmem>>, vector<1x1x2x128xf32>,
    %28 = vector.extract_strided_slice %1 {offsets = [0, 0, 0], sizes = [1, 2, 128], strides = [1, 1, 1]} : vector<4x2x128xf32> to vector<1x2x128xf32>
    %29 = vector.shape_cast %28 : vector<1x2x128xf32> to vector<2x128xf32>
    %c4 = arith.constant 4 : index
    %30 = memref.load %arg2[%c4] : memref<16xf32, #tpu.memory_space<smem>>
    %31 = vector.broadcast %30 : f32 to vector<2x128xf32>
    %32 = arith.mulf %29, %31 : vector<2x128xf32>
    %33 = vector.extract_strided_slice %1 {offsets = [1, 0, 0], sizes = [1, 2, 128], strides = [1, 1, 1]} : vector<4x2x128xf32> to vector<1x2x128xf32>
    %34 = vector.shape_cast %33 : vector<1x2x128xf32> to vector<2x128xf32>
    %c5 = arith.constant 5 : index
    %35 = memref.load %arg2[%c5] : memref<16xf32, #tpu.memory_space<smem>>
    %36 = vector.broadcast %35 : f32 to vector<2x128xf32>
    %37 = arith.mulf %34, %36 : vector<2x128xf32>
    %38 = arith.addf %32, %37 : vector<2x128xf32>
    %39 = vector.extract_strided_slice %1 {offsets = [2, 0, 0], sizes = [1, 2, 128], strides = [1, 1, 1]} : vector<4x2x128xf32> to vector<1x2x128xf32>
    %40 = vector.shape_cast %39 : vector<1x2x128xf32> to vector<2x128xf32>
    %c6 = arith.constant 6 : index
    %41 = memref.load %arg2[%c6] : memref<16xf32, #tpu.memory_space<smem>>
    %42 = vector.broadcast %41 : f32 to vector<2x128xf32>
    %43 = arith.mulf %40, %42 : vector<2x128xf32>
    %44 = arith.addf %38, %43 : vector<2x128xf32>
    %45 = vector.extract_strided_slice %1 {offsets = [3, 0, 0], sizes = [1, 2, 128], strides = [1, 1, 1]} : vector<4x2x128xf32> to vector<1x2x128xf32>
    %46 = vector.shape_cast %45 : vector<1x2x128xf32> to vector<2x128xf32>
    %c7 = arith.constant 7 : index
    %47 = memref.load %arg2[%c7] : memref<16xf32, #tpu.memory_space<smem>>
    %48 = vector.broadcast %47 : f32 to vector<2x128xf32>
    %49 = arith.mulf %46, %48 : vector<2x128xf32>
    %50 = arith.addf %44, %49 : vector<2x128xf32>
    %c0_8 = arith.constant 0 : index
    %c1_9 = arith.constant 1 : index
    %c0_10 = arith.constant 0 : index
    %c0_11 = arith.constant 0 : index
    %51 = vector.load %arg4[%c0_8, %c1_9, %c0_10, %c0_11] : memref<1x4x2x128xf32, #tpu.memory_space<vmem>>, vector<1x1x2x128xf32>
    %52 = vector.shape_cast %51 : vector<1x1x2x128xf32> to vector<2x128xf32>
    %53 = vector.shape_cast %50 : vector<2x128xf32> to vector<1x1x2x128xf32>
    tpu.vector_store %arg4[%c0_8, %c1_9, %c0_10, %c0_11], %53 {strides = array<i32>} : memref<1x4x2x128xf32, #tpu.memory_space<vmem>>, vector<1x1x2x128xf32>,
    %54 = vector.extract_strided_slice %1 {offsets = [0, 0, 0], sizes = [1, 2, 128], strides = [1, 1, 1]} : vector<4x2x128xf32> to vector<1x2x128xf32>
    %55 = vector.shape_cast %54 : vector<1x2x128xf32> to vector<2x128xf32>
    %c8 = arith.constant 8 : index
    %56 = memref.load %arg2[%c8] : memref<16xf32, #tpu.memory_space<smem>>
    %57 = vector.broadcast %56 : f32 to vector<2x128xf32>
    %58 = arith.mulf %55, %57 : vector<2x128xf32>
    %59 = vector.extract_strided_slice %1 {offsets = [1, 0, 0], sizes = [1, 2, 128], strides = [1, 1, 1]} : vector<4x2x128xf32> to vector<1x2x128xf32>
    %60 = vector.shape_cast %59 : vector<1x2x128xf32> to vector<2x128xf32>
    %c9 = arith.constant 9 : index
    %61 = memref.load %arg2[%c9] : memref<16xf32, #tpu.memory_space<smem>>
    %62 = vector.broadcast %61 : f32 to vector<2x128xf32>
    %63 = arith.mulf %60, %62 : vector<2x128xf32>
    %64 = arith.addf %58, %63 : vector<2x128xf32>
    %65 = vector.extract_strided_slice %1 {offsets = [2, 0, 0], sizes = [1, 2, 128], strides = [1, 1, 1]} : vector<4x2x128xf32> to vector<1x2x128xf32>
    %66 = vector.shape_cast %65 : vector<1x2x128xf32> to vector<2x128xf32>
    %c10 = arith.constant 10 : index
    %67 = memref.load %arg2[%c10] : memref<16xf32, #tpu.memory_space<smem>>
    %68 = vector.broadcast %67 : f32 to vector<2x128xf32>
    %69 = arith.mulf %66, %68 : vector<2x128xf32>
    %70 = arith.addf %64, %69 : vector<2x128xf32>
    %71 = vector.extract_strided_slice %1 {offsets = [3, 0, 0], sizes = [1, 2, 128], strides = [1, 1, 1]} : vector<4x2x128xf32> to vector<1x2x128xf32>
    %72 = vector.shape_cast %71 : vector<1x2x128xf32> to vector<2x128xf32>
    %c11 = arith.constant 11 : index
    %73 = memref.load %arg2[%c11] : memref<16xf32, #tpu.memory_space<smem>>
    %74 = vector.broadcast %73 : f32 to vector<2x128xf32>
    %75 = arith.mulf %72, %74 : vector<2x128xf32>
    %76 = arith.addf %70, %75 : vector<2x128xf32>
    %c0_12 = arith.constant 0 : index
    %c2_13 = arith.constant 2 : index
    %c0_14 = arith.constant 0 : index
    %c0_15 = arith.constant 0 : index
    %77 = vector.load %arg4[%c0_12, %c2_13, %c0_14, %c0_15] : memref<1x4x2x128xf32, #tpu.memory_space<vmem>>, vector<1x1x2x128xf32>
    %78 = vector.shape_cast %77 : vector<1x1x2x128xf32> to vector<2x128xf32>
    %79 = vector.shape_cast %76 : vector<2x128xf32> to vector<1x1x2x128xf32>
    tpu.vector_store %arg4[%c0_12, %c2_13, %c0_14, %c0_15], %79 {strides = array<i32>} : memref<1x4x2x128xf32, #tpu.memory_space<vmem>>, vector<1x1x2x128xf32>,
    %80 = vector.extract_strided_slice %1 {offsets = [0, 0, 0], sizes = [1, 2, 128], strides = [1, 1, 1]} : vector<4x2x128xf32> to vector<1x2x128xf32>
    %81 = vector.shape_cast %80 : vector<1x2x128xf32> to vector<2x128xf32>
    %c12 = arith.constant 12 : index
    %82 = memref.load %arg2[%c12] : memref<16xf32, #tpu.memory_space<smem>>
    %83 = vector.broadcast %82 : f32 to vector<2x128xf32>
    %84 = arith.mulf %81, %83 : vector<2x128xf32>
    %85 = vector.extract_strided_slice %1 {offsets = [1, 0, 0], sizes = [1, 2, 128], strides = [1, 1, 1]} : vector<4x2x128xf32> to vector<1x2x128xf32>
    %86 = vector.shape_cast %85 : vector<1x2x128xf32> to vector<2x128xf32>
    %c13 = arith.constant 13 : index
    %87 = memref.load %arg2[%c13] : memref<16xf32, #tpu.memory_space<smem>>
    %88 = vector.broadcast %87 : f32 to vector<2x128xf32>
    %89 = arith.mulf %86, %88 : vector<2x128xf32>
    %90 = arith.addf %84, %89 : vector<2x128xf32>
    %91 = vector.extract_strided_slice %1 {offsets = [2, 0, 0], sizes = [1, 2, 128], strides = [1, 1, 1]} : vector<4x2x128xf32> to vector<1x2x128xf32>
    %92 = vector.shape_cast %91 : vector<1x2x128xf32> to vector<2x128xf32>
    %c14 = arith.constant 14 : index
    %93 = memref.load %arg2[%c14] : memref<16xf32, #tpu.memory_space<smem>>
    %94 = vector.broadcast %93 : f32 to vector<2x128xf32>
    %95 = arith.mulf %92, %94 : vector<2x128xf32>
    %96 = arith.addf %90, %95 : vector<2x128xf32>
    %97 = vector.extract_strided_slice %1 {offsets = [3, 0, 0], sizes = [1, 2, 128], strides = [1, 1, 1]} : vector<4x2x128xf32> to vector<1x2x128xf32>
    %98 = vector.shape_cast %97 : vector<1x2x128xf32> to vector<2x128xf32>
    %c15 = arith.constant 15 : index
    %99 = memref.load %arg2[%c15] : memref<16xf32, #tpu.memory_space<smem>>
    %100 = vector.broadcast %99 : f32 to vector<2x128xf32>
    %101 = arith.mulf %98, %100 : vector<2x128xf32>
    %102 = arith.addf %96, %101 : vector<2x128xf32>
    %c0_16 = arith.constant 0 : index
    %c3_17 = arith.constant 3 : index
    %c0_18 = arith.constant 0 : index
    %c0_19 = arith.constant 0 : index
    %103 = vector.load %arg4[%c0_16, %c3_17, %c0_18, %c0_19] : memref<1x4x2x128xf32, #tpu.memory_space<vmem>>, vector<1x1x2x128xf32>
    %104 = vector.shape_cast %103 : vector<1x1x2x128xf32> to vector<2x128xf32>
    %105 = vector.shape_cast %102 : vector<2x128xf32> to vector<1x1x2x128xf32>
    tpu.vector_store %arg4[%c0_16, %c3_17, %c0_18, %c0_19], %105 {strides = array<i32>} : memref<1x4x2x128xf32, #tpu.memory_space<vmem>>, vector<1x1x2x128xf32>,
    return
  }
  func.func @transform_0(%arg0: i32, %arg1: i32) -> i32 {
    %c0_i32 = arith.constant 0 : i32
    %c0_i32_0 = arith.constant 0 : i32
    return %c0_i32 : i32
  }
  func.func @transform_1(%arg0: i32, %arg1: i32) -> (i32, i32, i32, i32) {
    %c0_i32 = arith.constant 0 : i32
    %c0_i32_0 = arith.constant 0 : i32
    %c0_i32_1 = arith.constant 0 : i32
    return %arg0, %c0_i32, %arg1, %c0_i32_0 : i32, i32, i32, i32
  }
  func.func @transform_2(%arg0: i32, %arg1: i32) -> (i32, i32, i32, i32) {
    %c0_i32 = arith.constant 0 : i32
    %c0_i32_0 = arith.constant 0 : i32
    %c0_i32_1 = arith.constant 0 : i32
    return %arg0, %c0_i32, %arg1, %c0_i32_0 : i32, i32, i32, i32
  }
}

</mosaic_0001>

<bundles_post_ra>
// kernel: tpu_custom_call.1
= control target key start
LH: loop header
LB: loop body
LE: loop exit
PB: predicated region body
PF: predicated region fallthrough
CT: control target
= control target key end

     0   :  { %7 = vsyncpa [#allocation5], 0  ;;  %s861_s0 = inlined_call_operand.hbm [shape: f32[16], index: 0, kind: input, shape index: {}]   ;;  %s862_s1 = inlined_call_operand.hbm [shape: f32[2,4,2,128], index: 1, kind: input, shape index: {}]   ;;  %s863_s2 = inlined_call_operand.hbm [shape: f32[2,4,2,128], index: 2, kind: output, shape index: {}]  }
   0x1   :  { %8 = vsyncpa [#allocation3], 0 }
   0x2   :  { %10 = vsyncpa [#allocation3 + $0x1], 0 }
   0x3   :  { %11 = vsyncpa [#allocation4], 0 }
   0x4   :  { %13 = vsyncpa [#allocation4 + $0x1], 0  ;;  %s641_s9 = smov 0   ;;  %s643_s10 = smov 0  }
   0x5   :  { %s645_s11 = smov 0   ;;  %s647_s12 = smov 0  }
   0x6   :  { %s649_s13 = smov 0   ;;  %s651_s14 = smov 0  }
   0x7 LB: > { %s374_s15 = sadd.s32 4294967295, %s617_s14   ;;  %s375_s16 = sadd.s32 4294967294, %s617_s14   ;;  %s617_s14 = sphi %s651_s14, %s19_s14   ;;  %s613_s13 = sphi %s649_s13, %s883_s13   ;;  %s609_s12 = sphi %s647_s12, %s882_s12   ;;  %s605_s11 = sphi %s645_s11, %s881_s11   ;;  %s601_s10 = sphi %s643_s10, %s880_s10   ;;  %s597_s9 = sphi %s641_s9, %s879_s9  }
   0x8   : > { %s61_s17 = sadd.s32 1, %s605_s11  ;;  %p68_p0 = scmp.ne.s32.totalorder %s605_s11, %s601_s10 }
   0x9   : > { %p69_p1 = scmp.eq.s32.totalorder %s617_s14, 0  ;;  %p74_p2 = scmp.ne.s32.totalorder %s601_s10, %s597_s9 }
   0xa   : > { %p679_p3 = scmp.eq.s32.totalorder %s374_s15, 0  ;;  %p100_p4 = scmp.eq.s32.totalorder %s374_s15, 1 }
   0xb   : > { %p70_p5 = por %p69_p1, %p68_p0  ;;  %p106_p6 = scmp.eq.s32.totalorder %s375_s16, 1 }
   0xc   : > { %s868_s18 = scalar_select %p679_p3, 1, 0 }
   0xd   : > { %p685_p7 = por %p679_p3, %p74_p2  ;;  %p689_p8 = por %p100_p4, %p68_p0 }
   0xe   : > { %p693_p9 = por %p106_p6, %p74_p2  ;;  %p376_p10 = scmp.ge.s32.totalorder %s617_s14, 1 }
   0xf   : > { %s869_s19 = scalar_select %p685_p7, 1, 0 }
  0x10   : > { %s870_s20 = scalar_select %p689_p8, 1, 0 }
  0x11   : > { %s871_s21 = scalar_select %p693_p9, 1, 0 }
  0x12   : > { %p113_p11 = scmp.lt.s32.totalorder %s617_s14, 3  ;;  %p432_p1 = scmp.lt.s32.totalorder %s617_s14, 2 }
  0x13   : > { %s135_s23 = sand.u32 1, %s605_s11   ;;  %s31_s25 = sadd.s32 1, %s613_s13 }
  0x14   : > { %p700_p13 = pnand %p376_p10, %p113_p11  ;;  %p708_p0 = pnand %p432_p1, %p70_p5 }
  0x15   : > { %s379_s26 = sshll.u32 %s135_s23, 3  ;;  %p33_p4 = scmp.ge.s32.totalorder %s31_s25, 2 }
  0x16   : > { %p419_p7 = pneg %p700_p13  ;;  %s488_s29 = scalar_lea.hbm %s861_s0, 16 }
  0x17   : > { %p489_p6 = scmp.ne.s32.totalorder %s861_s0, %s488_s29  ;;  %p495_p5 = scmp.lt.u32.totalorder %s488_s29, %s861_s0 }
  0x18   : > { %p420_p2 = pnand %p419_p7, %p679_p3 }
  0x1a   : > { %p490_p10 = pneg %p420_p2 }
  0x1c   : > { %p491_p11 = pnand %p490_p10, %p489_p6 }
  0x1e   : > { %p492_p12 = pneg %p491_p11 }
  0x20   : > { %p497_p1 = pnand %p495_p5, %p492_p12 }
  0x22   : > { %500 = shalt.err (!%p497_p1)
}
  0x23   : > { %s619_s6 = smov [#allocation2]   ;;  %s885_s25 = smov (%p33_p4, %s31_s25), 0 }
  0x24   : > { %422 = dma.hbm_to_smem (!%p420_p2), %s861_s0, 16, %s619_s6, [#allocation5]  }
  0x25   : > { %s409_s15 = sshll.u32 %s613_s13, 7  ;;  %s56_s16 = ssub.s32 %s613_s13, %s885_s25 }
  0x26   : > { %s735_s29 = scalar_lea.hbm %s862_s1, %s409_s15  ;;  %p59_p7 = scmp.eq.s32.totalorder %s56_s16, 0 }
  0x27   : > { %s139_s30 = scalar_lea.vmem [#allocation6], %s379_s26  ;;  %s744_s5 = scalar_lea.sflag [#allocation3], %s135_s23 }
  0x28   : > { %s147_s3 = sshll.u32 %s139_s30, 4  ;;  %s501_s6 = scalar_lea.hbm %s735_s29, 128  ;;  %s737_s3 = int_to_ptr.vmem [resolvable:$true] %s147_s3 }
  0x29   : > { %s742_s4 = scalar_select %p59_p7, %s605_s11, %s61_s17  }
  0x2a   : > { %p502_p12 = scmp.ne.s32.totalorder %s735_s29, %s501_s6  ;;  %p503_p2 = pneg %p708_p0 }
  0x2b   : > { %s506_s26 = scalar_lea.hbm %s862_s1, 256  ;;  %p507_p10 = scmp.lt.u32.totalorder %s735_s29, %s862_s1 }
  0x2c   : > { %p504_p4 = pnand %p503_p2, %p502_p12  ;;  %p508_p11 = scmp.lt.u32.totalorder %s506_s26, %s501_s6 }
  0x2d   : > { %p510_p1 = scmp.lt.u32.totalorder %s501_s6, %s735_s29 }
  0x2e   : > { %p505_p6 = pneg %p504_p4  ;;  %p509_p5 = por %p508_p11, %p507_p10 }
  0x30   : > { %p511_p7 = por %p510_p1, %p509_p5 }
  0x32   : > { %p512_p9 = pnand %p511_p7, %p505_p6 }
  0x34   : > { %515 = shalt.err (!%p512_p9)
}
  0x35   : > { %s516_s17 = scalar_lea.vmem %s737_s3, 128  ;;  %s620_s23 = smov [#allocation6]  }
  0x36   : > { %p517_p12 = scmp.ne.s32.totalorder %s737_s3, %s516_s17  ;;  %s521_s27 = sshll.u32 %s620_s23, 4  ;;  %s522_s27 = int_to_ptr.vmem [resolvable:$false] %s521_s27 }
  0x37   : > { %s523_s28 = scalar_lea.vmem %s522_s27, 256  ;;  %p524_p3 = scmp.lt.s32.totalorder %s737_s3, %s522_s27 }
  0x38   : > { %p519_p4 = pnand %p517_p12, %p503_p2  ;;  %p525_p10 = scmp.lt.s32.totalorder %s523_s28, %s516_s17 }
  0x3a   : > { %p520_p8 = pneg %p519_p4  ;;  %p526_p11 = por %p525_p10, %p524_p3 }
  0x3c   : > { %p527_p5 = pnand %p526_p11, %p520_p8 }
  0x3e   : > { %530 = shalt.err (!%p527_p5)
}
  0x3f   : > { %s621_s30 = smov 32   ;;  %s622_s6 = smov 2  }
  0x40   : > { %426 = dma.hbm_to_vmem [thread:$0]  (!%p708_p0), %s735_s29, 128, %s737_s3, %s744_s5, %s621_s30, %s621_s30, %s622_s6  }
  0x41   : > { %159 = sbr.rel (%p700_p13) target bundleno = 117 (0x75), region = 28  ;;  %p874_p9 = scmp.ne.s32.totalorder (!%p700_p13), %s868_s18, 0 }
  0x48   : > { %584 = dma.done.wait (%p874_p9), [#allocation5], 16  }
  0x49   : > { %586 = vsyncadd (%p874_p9), [#allocation5], 4294967280  ;;  %s779_s7 = sand.u32 1, %s601_s10   ;;  %p875_p3 = scmp.ne.s32.totalorder %s869_s19, 0 }
  0x4a   : > { %s384_s8 = sshll.u32 %s779_s7, 3  ;;  %s166_s26 = scalar_lea.sflag [#allocation3], %s779_s7 }
  0x4b   : > { %s169_s24 = scalar_lea.vmem [#allocation6], %s384_s8 }
  0x4c   : > { %588 = dma.done.wait (%p875_p3), %s166_s26, 128  }
  0x4d   : > { %590 = vsyncadd (%p875_p3), %s166_s26, 4294967168 }
  0x4e   : > { %174 = sfence }
  0x4f   : > { %s195_s22 = sld [smem:[#allocation2]]  ;;  %s386_s18 = sld [smem:[#allocation2 + $0x1]]  ;;  %v191_v0 = vld [vmem:[%s169_s24] sm:$0x3]  ;;  %v192_v1 = vld [vmem:[%s169_s24 + $0x2] sm:$0x3] }
  0x50   : > { %s387_s29 = sld [smem:[#allocation2 + $0x2]]  ;;  %s388_s3 = sld [smem:[#allocation2 + $0x3]]  ;;  %v193_v2 = vld [vmem:[%s169_s24 + $0x4] sm:$0x3]  ;;  %v194_v3 = vld [vmem:[%s169_s24 + $0x6] sm:$0x3] }
  0x51   : > { %s389_s5 = sld [smem:[#allocation2 + $0x4]]  ;;  %s390_s15 = sld [smem:[#allocation2 + $0x5]] }
  0x52   : > { %s391_s16 = sld [smem:[#allocation2 + $0x6]]  ;;  %s392_s17 = sld [smem:[#allocation2 + $0x7]] }
  0x53   : > { %s394_s23 = sld [smem:[#allocation2 + $0x8]]  ;;  %s395_s27 = sld [smem:[#allocation2 + $0x9]] }
  0x54   : > { %s789_s28 = sld [smem:[#allocation2 + $0xa]]  ;;  %s397_s19 = sld [smem:[#allocation2 + $0xb]] }
  0x55   : > { %v196_v4 = vstv %s195_s22  ;;  %v199_v6 = vstv %s386_s18  ;;  %s791_s30 = sld [smem:[#allocation2 + $0xc]]  ;;  %s793_s6 = sld [smem:[#allocation2 + $0xd]] }
  0x56   : > { %v197_v5 = vmul.f32 %v196_v4, %v191_v0  ;;  %v203_v7 = vstv %s387_s29  ;;  %v200_v8 = vmul.f32 %v199_v6, %v192_v1  ;;  %v207_v10 = vstv %s388_s3  ;;  %s795_s26 = sld [smem:[#allocation2 + $0xe]]  ;;  %s797_s24 = sld [smem:[#allocation2 + $0xf]] }
  0x57   : > { %v204_v9 = vmul.f32 %v203_v7, %v193_v2  ;;  %v208_v11 = vmul.f32 %v207_v10, %v194_v3  ;;  %v212_v12 = vstv %s389_s5  ;;  %v215_v15 = vstv %s390_s15  ;;  %s190_s22 = scalar_lea.vmem [#allocation7], %s384_s8  ;;  %s410_s29 = sshll.u32 %s609_s12, 7 }
  0x58   : > { %v201_v13 = vadd.f32 %v200_v8, %v197_v5  ;;  %v213_v14 = vmul.f32 %v212_v12, %v191_v0  ;;  %v219_v16 = vstv %s391_s16  ;;  %v216_v17 = vmul.f32 %v215_v15, %v192_v1  ;;  %s277_s18 = sshll.u32 %s190_s22, 4  ;;  %s812_s5 = scalar_lea.hbm %s863_s2, %s410_s29  ;;  %s807_s18 = int_to_ptr.vmem [resolvable:$true] %s277_s18 }
  0x59   : > { %v220_v18 = vmul.f32 %v219_v16, %v193_v2  ;;  %v223_v19 = vstv %s392_s17  ;;  %v229_v20 = vstv %s394_s23  ;;  %v232_v24 = vstv %s395_s27  ;;  %s263_s15 = scalar_lea.sflag [#allocation4], %s779_s7  ;;  %s531_s16 = scalar_lea.vmem %s807_s18, 128 }
  0x5a   : > { %v205_v21 = vadd.f32 %v204_v9, %v201_v13  ;;  %v224_v22 = vmul.f32 %v223_v19, %v194_v3  ;;  %v230_v23 = vmul.f32 %v229_v20, %v191_v0  ;;  %v217_v25 = vadd.f32 %v216_v17, %v213_v14  ;;  %p532_p8 = scmp.ne.s32.totalorder %s807_s18, %s531_s16  ;;  %p876_p13 = scmp.ne.s32.totalorder %s870_s20, 0 }
  0x5b   : > { %v233_v26 = vmul.f32 %v232_v24, %v192_v1  ;;  %v236_v27 = vstv %s789_s28  ;;  %v240_v28 = vstv %s397_s19  ;;  %v246_v32 = vstv %s791_s30  ;;  %s623_s12 = smov [#allocation7]  }
  0x5c   : > { %v209_v29 = vadd.f32 %v208_v11, %v205_v21  ;;  %v237_v30 = vmul.f32 %v236_v27, %v193_v2  ;;  %v241_v31 = vmul.f32 %v240_v28, %v194_v3  ;;  %v221_v33 = vadd.f32 %v220_v18, %v217_v25  ;;  %p533_p0 = pnand %p532_p8, %p876_p13  ;;  %s535_s17 = sshll.u32 %s623_s12, 4  ;;  %s536_s17 = int_to_ptr.vmem [resolvable:$false] %s535_s17 }
  0x5d   : > { %v234_v34 = vadd.f32 %v233_v26, %v230_v23  ;;  %v247_v35 = vmul.f32 %v246_v32, %v191_v0  ;;  %v249_v36 = vstv %s793_s6  ;;  %v253_v38 = vstv %s795_s26  ;;  %s537_s23 = scalar_lea.vmem %s536_s17, 256  ;;  %p538_p6 = scmp.lt.s32.totalorder %s807_s18, %s536_s17 }
  0x5e   : > { %210 = vst [vmem:[%s190_s22] sm:$0x3] %v209_v29  ;;  %v250_v37 = vmul.f32 %v249_v36, %v192_v1  ;;  %v257_v39 = vstv %s797_s24  ;;  %v225_v40 = vadd.f32 %v224_v22, %v221_v33  ;;  %v254_v42 = vmul.f32 %v253_v38, %v193_v2  ;;  %p534_p2 = pneg %p533_p0  ;;  %p539_p1 = scmp.lt.s32.totalorder %s537_s23, %s531_s16 }
  0x5f   : > { %v238_v41 = vadd.f32 %v237_v30, %v234_v34  ;;  %v258_v44 = vmul.f32 %v257_v39, %v194_v3 }
  0x60   : > { %v251_v43 = vadd.f32 %v250_v37, %v247_v35  ;;  %393 = vst [vmem:[%s190_s22 + $0x2] sm:$0x3] %v225_v40  ;;  %p540_p7 = por %p539_p1, %p538_p6 }
  0x61   : > { %v242_v45 = vadd.f32 %v241_v31, %v238_v41 }
  0x62   : > { %v255_v46 = vadd.f32 %v254_v42, %v251_v43  ;;  %p541_p12 = pnand %p540_p7, %p534_p2 }
  0x63   : > { %398 = vst [vmem:[%s190_s22 + $0x4] sm:$0x3] %v242_v45 }
  0x64   : > { %v259_v47 = vadd.f32 %v258_v44, %v255_v46 }
  0x66   : > { %403 = vst [vmem:[%s190_s22 + $0x6] sm:$0x3] %v259_v47 }
  0x67   : > { %544 = shalt.err (!%p541_p12)
}
  0x68   : > { %s545_s27 = scalar_lea.hbm %s812_s5, 128  ;;  %s549_s30 = scalar_lea.hbm %s863_s2, 256 }
  0x69   : > { %p546_p4 = scmp.ne.s32.totalorder %s812_s5, %s545_s27  ;;  %p550_p5 = scmp.lt.u32.totalorder %s812_s5, %s863_s2 }
  0x6a   : > { %p551_p9 = scmp.lt.u32.totalorder %s549_s30, %s545_s27  ;;  %p553_p8 = scmp.lt.u32.totalorder %s545_s27, %s812_s5 }
  0x6b   : > { %p547_p10 = pnand %p546_p4, %p876_p13 }
  0x6c   : > { %p552_p3 = por %p551_p9, %p550_p5 }
  0x6d   : > { %p548_p11 = pneg %p547_p10 }
  0x6e   : > { %p554_p0 = por %p553_p8, %p552_p3 }
  0x70   : > { %p555_p2 = pnand %p554_p0, %p548_p11 }
  0x72   : > { %558 = shalt.err (!%p555_p2)
}
  0x73   : > { %s624_s24 = smov 32   ;;  %s625_s22 = smov 2  }
  0x74   : > { %417 = dma.vmem_to_hbm [thread:$0]  (%p876_p13), %s807_s18, 128, %s812_s5, %s263_s15, %s624_s24, %s624_s24, %s625_s22  }
  0x75 PF: > { %s292_s29 = sand.u32 1, %s597_s9   ;;  %p877_p6 = scmp.ne.s32.totalorder %s871_s21, 0 }
  0x76   : > { %p878_p1 = scmp.ge.s32.totalorder %s617_s14, 2  ;;  %s293_s8 = scalar_lea.sflag [#allocation4], %s292_s29 }
  0x78   : > { %p428_p7 = pnand %p878_p1, %p877_p6 }
  0x7a   : > { %592 = dma.done.wait (!%p428_p7), %s293_s8, 128  }
  0x7b   : > { %594 = vsyncadd (!%p428_p7), %s293_s8, 4294967168  ;;  %s19_s14 = sadd.s32 1, %s617_s14   ;;  %s879_s9 = smov %s601_s10 }
  0x7c   : > { %p16_p12 = scmp.ge.s32.totalorder %s19_s14, 4   ;;  %s880_s10 = smov %s605_s11 }
  0x7d   : > { %s881_s11 = smov %s742_s4  ;;  %s882_s12 = smov %s613_s13 }
  0x7e   : > { %s883_s13 = smov %s885_s25  ;;  %18 = sbr.rel (!%p16_p12) target bundleno = 7 (0x7), region = 81 }
  0x85   :  { %298 = vsyncpa [#allocation3], 1 }
  0x86   :  { %300 = vsyncpa [#allocation3 + $0x1], 1 }
  0x87   :  { %301 = vsyncpa [#allocation4], 1 }
  0x88   :  { %303 = vsyncpa [#allocation4 + $0x1], 1 }
  0x89   :  { %304 = vsyncpa [#allocation5], 1 }
  0x8a   :  { %306 = vsyncpa [#allocation5 + $0x1], 1 }

</bundles_post_ra>
